<compile_context>
chip_gen: v5e
topology: v5e:2x2
jax: 0.10.0
libtpu: 0.0.40
codegen_flags: <defaults>
</compile_context>

<pallas_src>
import jax
import jax.numpy as jnp
from jax import lax
from jax.experimental import pallas as pl
from jax.experimental.pallas import tpu as pltpu

EPS = 1e-12


def _device_budgets():
    """Per-generation (hidden-tile byte budget, vmem_limit_bytes, megacore?)."""
    kind = ""
    try:
        kind = jax.devices()[0].device_kind.lower()
    except Exception:
        pass
    vmem_cap = None
    try:
        vmem_cap = int(pltpu.get_tpu_info().vmem_capacity_bytes)
    except Exception:
        pass
    # v7x: 64 MiB VMEM per TensorCore, 2 TCs/chip.  v5e/v6e: 128 MiB, 1 TC.
    is_v7 = ("7" in kind) or (vmem_cap is not None and vmem_cap <= 96 * 2**20)
    if is_v7:
        tile_bytes, vmem_limit = 6 * 2**20, 44 * 2**20
    else:
        tile_bytes, vmem_limit = 12 * 2**20, 80 * 2**20
    if vmem_cap:
        vmem_limit = min(vmem_limit, int(vmem_cap * 0.75))
    return tile_bytes, vmem_limit, is_v7


def _pick_tiles(B, S, H, itemsize, tile_bytes, megacore):
    """Choose (TB, TS, TH).

    Tiling constraints honored: tiled TS is a multiple of 128 (mask block's
    last dim) and of 8 (hidden block's sublane dim); tiled TH is a multiple of
    128; TB is either 8/16 (sublane-full) or equal to B.
    """
    TB = min(B, 8 if itemsize >= 4 else 16)
    TH = H
    row_bytes = TB * H * itemsize  # bytes of one sequence position at full H
    # Prefer full-H tiles (contiguous rows -> efficient DMA).  Split H only if
    # even a 128-row full-H tile blows the budget AND the whole sequence
    # doesn't fit in one tile either.
    if 128 * row_bytes > tile_bytes and S * row_bytes > tile_bytes:
        TH = max(128, (tile_bytes // (TB * 128 * itemsize)) // 128 * 128)
        row_bytes = TB * TH * itemsize
    ts_cap = max(1, tile_bytes // row_bytes)
    TS = S if S <= ts_cap else max(128, (ts_cap // 128) * 128)
    # v7x: only the "parallel" axes shard across the 2 TensorCores; make sure
    # there are >= 2 parallel blocks so the second core isn't idle.
    if megacore and pl.cdiv(B, TB) * pl.cdiv(H, TH) < 2:
        if TH == H and H % 256 == 0:
            TH = H // 2                      # two lane-dense H tiles
        elif TB > 8:
            TB = 8                           # sub-32-bit dtypes: 2 batch blocks
    return TB, TS, TH


def _make_kernel(S, TS):
    ragged_s = (S % TS) != 0

    def kernel(hidden_ref, mask_ref, out_ref, acc_ref, den_ref):
        # hidden_ref: (TB, TS, TH)   mask_ref: (TB, TS)   out_ref: (TB, TH)
        # acc_ref:    (TB, TH) f32   den_ref:  (TB, 1)  f32
        k = pl.program_id(2)  # sequence (reduction) axis, innermost

        @pl.when(k == 0)
        def _init():
            acc_ref[...] = jnp.zeros_like(acc_ref)
            den_ref[...] = jnp.zeros_like(den_ref)

        h = hidden_ref[...]                              # input dtype
        m = mask_ref[...]                                # (TB, TS)
        masked = h * m.astype(h.dtype)[..., None]        # (TB, TS, TH)
        if ragged_s:
            # Last S tile reads past the true sequence length: those positions
            # hold arbitrary HBM contents (possibly NaN/Inf), so zero them
            # explicitly instead of relying on garbage * 0.
            pos = k * TS + lax.broadcasted_iota(jnp.int32, (m.shape[0], TS), 1)
            valid = pos < S
            masked = jnp.where(valid[..., None], masked, 0)
            m = jnp.where(valid, m, 0)
        # f32 accumulation fused into the reduction (no full-tile f32 temp).
        acc_ref[...] += jnp.sum(masked, axis=1, dtype=jnp.float32)
        den_ref[...] += jnp.sum(m, axis=1, dtype=jnp.float32, keepdims=True)

        @pl.when(k == pl.num_programs(2) - 1)
        def _finalize():
            inv = pl.reciprocal(den_ref[...] + EPS, approx=False)
            out_ref[...] = (acc_ref[...] * inv).astype(out_ref.dtype)

    return kernel


def bert_avg(hidden_states, attention_mask, *, tile_bytes=None):
    """Masked average over seq: sum(h * m[...,None], 1) / (sum(m, 1) + eps)."""
    B, S, H = hidden_states.shape
    assert attention_mask.shape == (B, S)
    dtype = hidden_states.dtype
    itemsize = jnp.dtype(dtype).itemsize
    m_itemsize = jnp.dtype(attention_mask.dtype).itemsize

    auto_tile_bytes, vmem_limit, megacore = _device_budgets()
    if tile_bytes is None:
        tile_bytes = auto_tile_bytes
    TB, TS, TH = _pick_tiles(B, S, H, itemsize, tile_bytes, megacore)

    grid = (pl.cdiv(B, TB), pl.cdiv(H, TH), pl.cdiv(S, TS))

    cost = pl.CostEstimate(
        flops=2 * B * S * H,
        transcendentals=0,
        bytes_accessed=B * S * H * itemsize + B * S * m_itemsize + B * H * itemsize,
    )

    return pl.pallas_call(
        _make_kernel(S, TS),
        out_shape=jax.ShapeDtypeStruct((B, H), dtype),
        grid_spec=pltpu.PrefetchScalarGridSpec(
            num_scalar_prefetch=0,
            grid=grid,
            in_specs=[
                pl.BlockSpec((TB, TS, TH), lambda i, j, k: (i, k, j)),
                pl.BlockSpec((TB, TS), lambda i, j, k: (i, k)),
            ],
            out_specs=pl.BlockSpec((TB, TH), lambda i, j, k: (i, j)),
            scratch_shapes=[
                pltpu.VMEM((TB, TH), jnp.float32),   # numerator accumulator
                pltpu.VMEM((TB, 1), jnp.float32),    # denominator accumulator
            ],
        ),
        compiler_params=pltpu.CompilerParams(
            dimension_semantics=("parallel", "parallel", "arbitrary"),
            vmem_limit_bytes=vmem_limit,
        ),
        cost_estimate=cost,
    )(hidden_states, attention_mask)


def bert_avg_ref(hidden_states, attention_mask):
    m = attention_mask.astype(jnp.float32)
    h = hidden_states.astype(jnp.float32)
    num = jnp.sum(h * m[..., None], axis=1)
    den = jnp.sum(m, axis=1, keepdims=True) + EPS
    return (num / den).astype(hidden_states.dtype)


if __name__ == "__main__":
    key = jax.random.PRNGKey(0)
    k1, k2, k3, k4 = jax.random.split(key, 4)

    # Small shapes consistent with the module: batch=2, seq=8, hidden=32.
    B, S, H = 2, 8, 32
    hidden_states = jax.random.normal(k1, (B, S, H), dtype=jnp.float32)
    attention_mask = (jax.random.uniform(k2, (B, S)) > 0.3).astype(jnp.float32)

    out = bert_avg(hidden_states, attention_mask)
    jax.block_until_ready(out)
    ref = bert_avg_ref(hidden_states, attention_mask)
    assert out.shape == (B, H)
    assert jnp.allclose(out, ref, atol=1e-5, rtol=1e-5)

    # Second check: ragged batch block + ragged (tiled) sequence blocks via a
    # forced small tile budget, exercising the no-padding / in-kernel masking.
    B2, S2, H2 = 10, 200, 256
    hidden2 = jax.random.normal(k3, (B2, S2, H2), dtype=jnp.float32)
    mask2 = (jax.random.uniform(k4, (B2, S2)) > 0.3).astype(jnp.float32)
    out2 = bert_avg(hidden2, mask2, tile_bytes=1 << 20)
    jax.block_until_ready(out2)
    ref2 = bert_avg_ref(hidden2, mask2)
    assert out2.shape == (B2, H2)
    assert jnp.allclose(out2, ref2, atol=1e-4, rtol=1e-4)

    print("KERNEL_OK")
</pallas_src>

<mosaic_0001>
module attributes {stable_mosaic.version = 11 : i64} {
  func.func @kernel(%arg0: i32, %arg1: i32, %arg2: i32, %arg3: memref<2x8x32xf32, #tpu.memory_space<vmem>>, %arg4: memref<2x8xf32, #tpu.memory_space<vmem>>, %arg5: memref<2x32xf32, #tpu.memory_space<vmem>>, %arg6: memref<2x32xf32, #tpu.memory_space<vmem>>, %arg7: memref<2x1xf32, #tpu.memory_space<vmem>>) attributes {dimension_semantics = [#tpu.dimension_semantics<parallel>, #tpu.dimension_semantics<parallel>, #tpu.dimension_semantics<arbitrary>], iteration_bounds = array<i64: 1, 1, 1>, scalar_prefetch = 0 : i64, scratch_operands = 2 : i64, tpu.core_type = #tpu.core_type<tc>, window_params = [{transform_indices = @transform_0, window_bounds = array<i64: 2, 8, 32>}, {transform_indices = @transform_1, window_bounds = array<i64: 2, 8>}, {transform_indices = @transform_2, window_bounds = array<i64: 2, 32>}]} {
    %c0_i32 = arith.constant 0 : i32
    %0 = arith.cmpi eq, %arg2, %c0_i32 : i32
    %1 = arith.extui %0 : i1 to i32
    %c0_i32_0 = arith.constant 0 : i32
    %2 = arith.cmpi ne, %1, %c0_i32_0 : i32
    scf.if %2 {
      %cst_16 = arith.constant 0.000000e+00 : f32
      %20 = vector.broadcast %cst_16 : f32 to vector<2x32xf32>
      %c0_17 = arith.constant 0 : index
      %c0_18 = arith.constant 0 : index
      %21 = vector.load %arg6[%c0_17, %c0_18] : memref<2x32xf32, #tpu.memory_space<vmem>>, vector<2x32xf32>
      tpu.vector_store %arg6[%c0_17, %c0_18], %20 {strides = array<i32>} : memref<2x32xf32, #tpu.memory_space<vmem>>, vector<2x32xf32>,
      %cst_19 = arith.constant 0.000000e+00 : f32
      %22 = vector.broadcast %cst_19 : f32 to vector<2x1xf32>
      %c0_20 = arith.constant 0 : index
      %c0_21 = arith.constant 0 : index
      %23 = vector.load %arg7[%c0_20, %c0_21] : memref<2x1xf32, #tpu.memory_space<vmem>>, vector<2x1xf32>
      tpu.vector_store %arg7[%c0_20, %c0_21], %22 {strides = array<i32>} : memref<2x1xf32, #tpu.memory_space<vmem>>, vector<2x1xf32>,
    } else {
    }
    %c0 = arith.constant 0 : index
    %c0_1 = arith.constant 0 : index
    %c0_2 = arith.constant 0 : index
    %3 = vector.load %arg3[%c0, %c0_1, %c0_2] : memref<2x8x32xf32, #tpu.memory_space<vmem>>, vector<2x8x32xf32>
    %c0_3 = arith.constant 0 : index
    %c0_4 = arith.constant 0 : index
    %4 = vector.load %arg4[%c0_3, %c0_4] : memref<2x8xf32, #tpu.memory_space<vmem>>, vector<2x8xf32>
    %5 = vector.shape_cast %4 : vector<2x8xf32> to vector<2x8x1xf32>
    %6 = vector.broadcast %5 : vector<2x8x1xf32> to vector<2x8x32xf32>
    %7 = arith.mulf %3, %6 : vector<2x8x32xf32>
    %c0_5 = arith.constant 0 : index
    %c0_6 = arith.constant 0 : index
    %8 = vector.load %arg6[%c0_5, %c0_6] : memref<2x32xf32, #tpu.memory_space<vmem>>, vector<2x32xf32>
    %cst = arith.constant dense<0.000000e+00> : vector<2x32xf32>
    %9 = vector.multi_reduction <add>, %7, %cst [1] : vector<2x8x32xf32> to vector<2x32xf32>
    %10 = arith.addf %8, %9 : vector<2x32xf32>
    %c0_7 = arith.constant 0 : index
    %c0_8 = arith.constant 0 : index
    %11 = vector.load %arg6[%c0_7, %c0_8] : memref<2x32xf32, #tpu.memory_space<vmem>>, vector<2x32xf32>
    tpu.vector_store %arg6[%c0_7, %c0_8], %10 {strides = array<i32>} : memref<2x32xf32, #tpu.memory_space<vmem>>, vector<2x32xf32>,
    %c0_9 = arith.constant 0 : index
    %c0_10 = arith.constant 0 : index
    %12 = vector.load %arg7[%c0_9, %c0_10] : memref<2x1xf32, #tpu.memory_space<vmem>>, vector<2x1xf32>
    %cst_11 = arith.constant dense<0.000000e+00> : vector<2xf32>
    %13 = vector.multi_reduction <add>, %4, %cst_11 [1] : vector<2x8xf32> to vector<2xf32>
    %14 = vector.shape_cast %13 : vector<2xf32> to vector<2x1xf32>
    %15 = arith.addf %12, %14 : vector<2x1xf32>
    %c0_12 = arith.constant 0 : index
    %c0_13 = arith.constant 0 : index
    %16 = vector.load %arg7[%c0_12, %c0_13] : memref<2x1xf32, #tpu.memory_space<vmem>>, vector<2x1xf32>
    tpu.vector_store %arg7[%c0_12, %c0_13], %15 {strides = array<i32>} : memref<2x1xf32, #tpu.memory_space<vmem>>, vector<2x1xf32>,
    %c0_i32_14 = arith.constant 0 : i32
    %17 = arith.cmpi eq, %arg2, %c0_i32_14 : i32
    %18 = arith.extui %17 : i1 to i32
    %c0_i32_15 = arith.constant 0 : i32
    %19 = arith.cmpi ne, %18, %c0_i32_15 : i32
    scf.if %19 {
      %c0_16 = arith.constant 0 : index
      %c0_17 = arith.constant 0 : index
      %20 = vector.load %arg7[%c0_16, %c0_17] : memref<2x1xf32, #tpu.memory_space<vmem>>, vector<2x1xf32>
      %cst_18 = arith.constant 9.99999996E-13 : f32
      %21 = vector.broadcast %cst_18 : f32 to vector<2x1xf32>
      %22 = arith.addf %20, %21 : vector<2x1xf32>
      %23 = tpu.reciprocal %22 : vector<2x1xf32> -> vector<2x1xf32>
      %c0_19 = arith.constant 0 : index
      %c0_20 = arith.constant 0 : index
      %24 = vector.load %arg6[%c0_19, %c0_20] : memref<2x32xf32, #tpu.memory_space<vmem>>, vector<2x32xf32>
      %25 = vector.broadcast %23 : vector<2x1xf32> to vector<2x32xf32>
      %26 = arith.mulf %24, %25 : vector<2x32xf32>
      %c0_21 = arith.constant 0 : index
      %c0_22 = arith.constant 0 : index
      %27 = vector.load %arg5[%c0_21, %c0_22] : memref<2x32xf32, #tpu.memory_space<vmem>>, vector<2x32xf32>
      tpu.vector_store %arg5[%c0_21, %c0_22], %26 {strides = array<i32>} : memref<2x32xf32, #tpu.memory_space<vmem>>, vector<2x32xf32>,
    } else {
    }
    return
  }
  func.func @transform_0(%arg0: i32, %arg1: i32, %arg2: i32) -> (i32, i32, i32) {
    %c0_i32 = arith.constant 0 : i32
    return %arg0, %arg2, %arg1 : i32, i32, i32
  }
  func.func @transform_1(%arg0: i32, %arg1: i32, %arg2: i32) -> (i32, i32) {
    %c0_i32 = arith.constant 0 : i32
    return %arg0, %arg2 : i32, i32
  }
  func.func @transform_2(%arg0: i32, %arg1: i32, %arg2: i32) -> (i32, i32) {
    %c0_i32 = arith.constant 0 : i32
    return %arg0, %arg1 : i32, i32
  }
}

</mosaic_0001>

<bundles_post_ra>
// kernel: tpu_custom_call.1
= control target key start
LH: loop header
LB: loop body
LE: loop exit
PB: predicated region body
PF: predicated region fallthrough
CT: control target
= control target key end

     0   :  { %7 = vsyncpa [#allocation5], 0  ;;  %s273_s0 = inlined_call_operand.hbm [shape: f32[2,8,32], index: 0, kind: input, shape index: {}]   ;;  %s274_s1 = inlined_call_operand.hbm [shape: f32[2,8], index: 1, kind: input, shape index: {}]   ;;  %s275_s2 = inlined_call_operand.hbm [shape: f32[2,32], index: 2, kind: output, shape index: {}]  }
   0x1   :  { %8 = vsyncpa [#allocation8], 0 }
   0x2   :  { %9 = vsyncpa [#allocation6], 0  ;;  %s14_s11 = sshll.u32 %s273_s0, 4  ;;  %s237_s12 = smov [#allocation4]   ;;  %s15_s11 = int_to_ptr.hbm [resolvable:$true] %s14_s11 }
   0x3   :  { %s16_s13 = sshll.u32 %s237_s12, 4  ;;  %s28_s16 = sshll.u32 %s274_s1, 4  ;;  %s17_s13 = int_to_ptr.vmem [resolvable:$true] %s16_s13  ;;  %s29_s16 = int_to_ptr.hbm [resolvable:$true] %s28_s16 }
   0x4   :  { %s238_s17 = smov 128   ;;  %s239_s18 = smov 8  }
   0x5   :  { %22 = dma.hbm_to_vmem [thread:$0]  %s15_s11, 256, %s17_s13, [#allocation5], %s238_s17, %s238_s17, %s239_s18  }
   0x6   :  { %s240_s19 = smov [#allocation7]  }
   0x7   :  { %s30_s20 = sshll.u32 %s240_s19, 4  ;;  %s31_s20 = int_to_ptr.vmem [resolvable:$true] %s30_s20 }
   0x8   :  { %33 = dma.hbm_to_vmem [thread:$0]  %s29_s16, 32, %s31_s20, [#allocation8]  }
   0x9   :  { %231 = dma.done.wait [#allocation5], 256  }
   0xa   :  { %232 = vsyncadd [#allocation5], 4294967040 }
   0xb   :  { %233 = dma.done.wait [#allocation8], 32  }
   0xc   :  { %234 = vsyncadd [#allocation8], 4294967264  ;;  %v54_v0 = vlaneseq  ;;  %vm48_vm0 = vcmask 1024   ;;  %v241_v1 = vmov 0.0   ;;  %vm94_vm1 = vcmask 58368   ;;  %v51_v24 = vld [vmem:[#allocation4 + $0x8] sm:$0xff] }
   0xd   :  { %49 = vst.msk [vmem:[#allocation3] sm:$0x3] %vm48_vm0, %v241_v1  ;;  %v52_v3 = vld [vmem:[#allocation7] sm:$0x3]  ;;  %v242_v7 = vmov 0   ;;  %vm46_vm2 = vcmask 254976  }
   0xe   :  { %v55_v2 = vshrl.u32 %v54_v0, 7  ;;  %v95_v4 = vsel %vm94_vm1, %v52_v3, 0.0  ;;  %v60_v5 = vperm.slane %v52_v3, 1  ;;  %v53_v6 = vperm.slane %v52_v3, 0  ;;  %47 = vst.msk [vmem:[#allocation2] sm:$0x3] %vm46_vm2, %v241_v1 }
   0xf   :  { %96 = vadd.xlane.f32.xlu0 %v95_v4  ;;  %v50_v26 = vld [vmem:[#allocation4] sm:$0xff]  ;;  %vm70_vm7 = vcmask 261120   ;;  %vm87_vm8 = vcmask 1041409   ;;  %s243_s0 = smov [#allocation9]   ;;  %s135_s23 = sshll.u32 %s275_s2, 4  ;;  %s136_s23 = int_to_ptr.hbm [resolvable:$true] %s135_s23 }
  0x10   :  { %154 = vset.pattern.permute.xlu1 %v55_v2  ;;  %153 = vset.pattern.permute.xlu0 %v55_v2  ;;  %s133_s1 = sshll.u32 %s243_s0, 4  ;;  %s134_s1 = int_to_ptr.vmem [resolvable:$true] %s133_s1 }
  0x14   :  { %v93_v8 = vld [vmem:[#allocation3] sm:$0x3] }
  0x15   :  { %v69_v44 = vld [vmem:[#allocation2] sm:$0x3] }
  0x18   :  { %65 = vperm.xlu1 %154, %v60_v5  }
  0x20   :  { %155 = vset.pattern.permute.xlu1 %v242_v7 }
  0x23   :  { %58 = vperm.xlu0 %153, %v53_v6  }
  0x2b   :  { %156 = vset.pattern.permute.xlu0 %v242_v7 }
  0x82   :  { %v97_v9 = vpop.xlane.xlu0 %96 }
  0x83   :  { %v98_v10 = vadd.f32 %v97_v9, %v93_v8 }
  0x85   :  { %100 = vst.msk [vmem:[#allocation3] sm:$0x3] %vm48_vm0, %v98_v10 }
  0x8a   :  { %v66_v23 = vpop.permute.xlu1 %65 }
  0x8b   :  { %v68_v27 = vmul.f32 %v66_v23, %v51_v24 }
  0x8c   :  { %v104_v11 = vld [vmem:[#allocation3] sm:$0x3] }
  0x8d   :  { %v105_v12 = vadd.f32 1e-12, %v104_v11  ;;  %v78_v29 = vsel %vm70_vm7, %v68_v27, 0.0 }
  0x8e   :  { %v79_v31 = vrot.slane %v78_v29, 4 }
  0x8f   :  { %157 = vrcp.f32 %v105_v12  ;;  %v117_v16 = vand.u32 2147483648, %v105_v12  ;;  %v115_v18 = vand.u32 2147483647, %v105_v12  ;;  %vm111_vm4 = vweird.f32 %v105_v12 }
  0x90   :  { %v80_v33 = vadd.f32 %v79_v31, %v78_v29 }
  0x91   :  { %v118_v20 = vor.u32 1.1754944e-38, %v117_v16  ;;  %vm116_vm6 = vcmp.eq.f32.partialorder %v115_v18, 8.507059e+37 }
  0x92   :  { %v81_v35 = vrot.slane %v80_v33, 2 }
  0x94   :  { %v82_v37 = vadd.f32 %v81_v35, %v80_v33 }
  0x95   :  { %v158_v13 = vpop.eup %157  ;;  %v59_v25 = vpop.permute.xlu0 %58 }
  0x96   :  { %v107_v14 = vmul.f32 %v158_v13, %v105_v12  ;;  %vm112_vm3 = vweird.f32 %v158_v13  ;;  %v67_v28 = vmul.f32 %v59_v25, %v50_v26  ;;  %v83_v39 = vrot.slane %v82_v37, 1 }
  0x97   :  { %vm113_vm5 = vmor %vm111_vm4, %vm112_vm3 }
  0x98   :  { %v108_v15 = vsub.f32 1.0, %v107_v14  ;;  %v71_v30 = vsel %vm70_vm7, %v67_v28, 0.0  ;;  %v84_v41 = vadd.f32 %v83_v39, %v82_v37 }
  0x99   :  { %v72_v32 = vrot.slane %v71_v30, 4 }
  0x9a   :  { %v109_v17 = vmul.f32 %v158_v13, %v108_v15 }
  0x9b   :  { %v73_v34 = vadd.f32 %v72_v32, %v71_v30 }
  0x9c   :  { %v110_v19 = vadd.f32 %v158_v13, %v109_v17 }
  0x9d   :  { %v74_v36 = vrot.slane %v73_v34, 2 }
  0x9e   :  { %v114_v21 = vsel %vm113_vm5, %v158_v13, %v110_v19 }
  0x9f   :  { %v119_v22 = vsel %vm116_vm6, %v118_v20, %v114_v21  ;;  %v75_v38 = vadd.f32 %v74_v36, %v73_v34 }
  0xa0   :  { %123 = vperm.xlu1 %155, %v119_v22  }
  0xa1   :  { %v76_v40 = vrot.slane %v75_v38, 1 }
  0xa3   :  { %v77_v42 = vadd.f32 %v76_v40, %v75_v38 }
  0xa5   :  { %v88_v43 = vsel %vm87_vm8, %v84_v41, %v77_v42 }
  0xa6   :  { %v90_v45 = vadd.f32 %v88_v43, %v69_v44 }
  0xa8   :  { %92 = vst.msk [vmem:[#allocation2] sm:$0x3] %vm46_vm2, %v90_v45 }
  0xaf   :  { %v120_v47 = vld [vmem:[#allocation2] sm:$0x3] }
 0x112   :  { %v124_v46 = vpop.permute.xlu1 %123 }
 0x113   :  { %v126_v48 = vmul.f32 %v124_v46, %v120_v47 }
 0x115   :  { %127 = vst.msk [vmem:[#allocation9] sm:$0x3] %vm46_vm2, %v126_v48 }
 0x116   :  { %138 = dma.vmem_to_hbm [thread:$0]  %s134_s1, 32, %s136_s23, [#allocation6]  }
 0x117   :  { %235 = dma.done.wait [#allocation6], 32  }
 0x118   :  { %236 = vsyncadd [#allocation6], 4294967264 }
 0x119   :  { %143 = vsyncpa [#allocation5], 1 }
 0x11a   :  { %144 = vsyncpa [#allocation8], 1 }
 0x11b   :  { %145 = vsyncpa [#allocation6], 1 }

</bundles_post_ra>
